<compile_context>
chip_gen: v7x
topology: tpu7x:2x2x1
jax: 0.10.0
libtpu: 0.0.40
codegen_flags: <defaults>
</compile_context>

<pallas_src>
import numpy as np
import jax
import jax.numpy as jnp
from jax import lax
from jax.experimental import pallas as pl
from jax.experimental.pallas import tpu as pltpu

LANE = 128


def _make_eos_kernel(Bblk, S, P):
    def kernel(pred_ref, tgt_ref, pj_ref, pi_ref, out_ref):
        pred = pred_ref[...]          # (Bblk, S) f32 logits
        tgt = tgt_ref[...]            # (Bblk, S) f32 binary targets
        pj = pj_ref[...]              # (Bblk, P) i32 target index of each path point (p on lanes)
        pi = pi_ref[...]              # (Bblk, P, 1) i32 pred index of each path point (p on sublanes)

        # Hoisted iotas: built once per batch block, reused by every unrolled iteration.
        iota_sp = lax.broadcasted_iota(jnp.int32, (S, P), 0)   # sublane index = s
        iota_ps = lax.broadcasted_iota(jnp.int32, (P, S), 1)   # lane index    = s

        gt_rows = []
        for b in range(Bblk):  # static unroll over the batch block (data-dependent part only)
            tgt_b = tgt[b:b + 1, :]                    # (1, S)
            pj_b = pj[b:b + 1, :]                      # (1, P)
            pi_b = pi[b]                               # (P, 1)

            # Gather target[path_j[p]] via a one-hot (S, P) mask; bf16 is exact for 0/1,
            # f32 accumulation makes the gathered value exactly target[j].
            maskJ = (jnp.broadcast_to(pj_b, (S, P)) == iota_sp).astype(jnp.bfloat16)
            tgt_at_p = jnp.dot(tgt_b.astype(jnp.bfloat16), maskJ,
                               preferred_element_type=jnp.float32)        # (1, P)
            positive = (tgt_at_p == 1.0).astype(jnp.bfloat16)             # target[j] == 1

            # Scatter positives into gt: maskI is built already transposed as (P, S)
            # (pi arrives sublane-major), so this is a plain (1,P)@(P,S) matmul — no
            # lane-dim contraction / implicit XLU transpose of the mask.
            maskI = (jnp.broadcast_to(pi_b, (P, S)) == iota_ps).astype(jnp.bfloat16)
            gt_rows.append(jnp.dot(positive, maskI,
                                   preferred_element_type=jnp.float32))   # (1, S) counts

        gt = (jnp.concatenate(gt_rows, axis=0) > 0.5).astype(jnp.float32)  # (Bblk, S)

        # Numerically-stable BCE with logits (same formula as torch BCEWithLogitsLoss),
        # vectorized over the whole (Bblk, S) slab.
        x = pred
        bce = jnp.maximum(x, 0.0) - x * gt + jnp.log1p(jnp.exp(-jnp.abs(x)))
        loss_vec = jnp.sum(bce, axis=1, keepdims=True) * jnp.float32(1.0 / S)  # (Bblk, 1)

        # Lane-dense output block; wrapper reads lane 0 of each batch row.
        out_ref[...] = jnp.broadcast_to(loss_vec, (Bblk, LANE))

    return kernel


def eos_loss(preds, targets, path_i, path_j, *, block_b=8):
    """preds, targets: (B, S) float32;  path_i, path_j: (B, P) int32."""
    B, S = preds.shape
    P = path_i.shape[1]

    Bblk = block_b
    B_pad = ((B + Bblk - 1) // Bblk) * Bblk
    pad = B_pad - B

    preds_p = jnp.pad(preds.astype(jnp.float32), ((0, pad), (0, 0)))
    tgts_p = jnp.pad(targets.astype(jnp.float32), ((0, pad), (0, 0)))
    pj_p = jnp.pad(path_j.astype(jnp.int32), ((0, pad), (0, 0)))
    # path_i fed sublane-major as (B_pad, P, 1) so the scatter mask is built as (P, S).
    pi_p = jnp.pad(path_i.astype(jnp.int32), ((0, pad), (0, 0))).reshape(B_pad, P, 1)

    out = pl.pallas_call(
        _make_eos_kernel(Bblk, S, P),
        out_shape=jax.ShapeDtypeStruct((B_pad, LANE), jnp.float32),
        grid_spec=pltpu.PrefetchScalarGridSpec(
            num_scalar_prefetch=0,
            grid=(B_pad // Bblk,),
            in_specs=[
                pl.BlockSpec((Bblk, S), lambda i: (i, 0)),
                pl.BlockSpec((Bblk, S), lambda i: (i, 0)),
                pl.BlockSpec((Bblk, P), lambda i: (i, 0)),
                pl.BlockSpec((Bblk, P, 1), lambda i: (i, 0, 0)),
            ],
            out_specs=pl.BlockSpec((Bblk, LANE), lambda i: (i, 0)),
        ),
        compiler_params=pltpu.CompilerParams(
            dimension_semantics=("parallel",),     # no cross-step accumulator -> both TCs on v7x
            vmem_limit_bytes=32 * 1024 * 1024,
        ),
    )(preds_p, tgts_p, pj_p, pi_p)

    # Per-batch mean BCE sits in lane 0; padded batches are dropped here. Final sum/B in JAX.
    return jnp.sum(out[:B, 0]) / B


def reference(preds, targets, path_i, path_j):
    preds = np.asarray(preds)
    targets = np.asarray(targets)
    path_i = np.asarray(path_i)
    path_j = np.asarray(path_j)
    B, S = preds.shape
    total = 0.0
    for b in range(B):
        gt = np.zeros(S, dtype=np.float32)
        for i, j in zip(path_i[b], path_j[b]):
            if targets[b, j] == 1:
                gt[i] = 1.0
        x = preds[b]
        bce = np.maximum(x, 0.0) - x * gt + np.log1p(np.exp(-np.abs(x)))
        total += bce.mean()
    return total / B


if __name__ == "__main__":
    key = jax.random.PRNGKey(0)

    # Case 1: small shapes matching the module's forward (batch=2, seq_len=8, path=10).
    B, S, P = 2, 8, 10
    k1, k2, k3, key = jax.random.split(key, 4)
    preds = jax.random.normal(k1, (B, S), dtype=jnp.float32)
    targets = jnp.zeros((B, S), dtype=jnp.float32).at[:, -2:].set(1.0)  # duplicated EoS tokens
    # TODO(synk): the PyTorch module takes a Python list of variable-length warping paths;
    # they are modeled as fixed-length (B, P) index arrays. Padding must repeat a real path
    # point (the gt scatter is idempotent), or point at a non-EoS target position.
    path_i = jnp.sort(jax.random.randint(k2, (B, P), 0, S, dtype=jnp.int32), axis=1)
    path_j = jnp.sort(jax.random.randint(k3, (B, P), 0, S, dtype=jnp.int32), axis=1)

    loss1 = jax.block_until_ready(eos_loss(preds, targets, path_i, path_j))
    ref1 = reference(preds, targets, path_i, path_j)
    np.testing.assert_allclose(float(loss1), float(ref1), rtol=1e-5, atol=1e-6)

    # Case 2: multi-block grid (B > Bblk) with mixed binary targets, exercises batch padding.
    B2, S2, P2 = 11, 16, 20
    k1, k2, k3, k4, key = jax.random.split(key, 5)
    preds2 = jax.random.normal(k1, (B2, S2), dtype=jnp.float32)
    targets2 = (jax.random.uniform(k4, (B2, S2)) < 0.25).astype(jnp.float32)
    targets2 = targets2.at[:, -2:].set(1.0)
    path_i2 = jnp.sort(jax.random.randint(k2, (B2, P2), 0, S2, dtype=jnp.int32), axis=1)
    path_j2 = jnp.sort(jax.random.randint(k3, (B2, P2), 0, S2, dtype=jnp.int32), axis=1)

    loss2 = jax.block_until_ready(eos_loss(preds2, targets2, path_i2, path_j2))
    ref2 = reference(preds2, targets2, path_i2, path_j2)
    np.testing.assert_allclose(float(loss2), float(ref2), rtol=1e-5, atol=1e-6)

    print("KERNEL_OK")
</pallas_src>

<mosaic_0001>
module attributes {stable_mosaic.version = 11 : i64} {
  func.func @kernel(%arg0: i32, %arg1: memref<8x8xf32, #tpu.memory_space<vmem>>, %arg2: memref<8x8xf32, #tpu.memory_space<vmem>>, %arg3: memref<8x10xi32, #tpu.memory_space<vmem>>, %arg4: memref<8x10x1xi32, #tpu.memory_space<vmem>>, %arg5: memref<8x128xf32, #tpu.memory_space<vmem>>) attributes {dimension_semantics = [#tpu.dimension_semantics<parallel>], iteration_bounds = array<i64: 1>, scalar_prefetch = 0 : i64, scratch_operands = 0 : i64, tpu.core_type = #tpu.core_type<tc>, window_params = [{transform_indices = @transform_0, window_bounds = array<i64: 8, 8>}, {transform_indices = @transform_1, window_bounds = array<i64: 8, 8>}, {transform_indices = @transform_2, window_bounds = array<i64: 8, 10>}, {transform_indices = @transform_3, window_bounds = array<i64: 8, 10, 1>}, {transform_indices = @transform_4, window_bounds = array<i64: 8, 128>}]} {
    %c0 = arith.constant 0 : index
    %c0_0 = arith.constant 0 : index
    %0 = vector.load %arg1[%c0, %c0_0] : memref<8x8xf32, #tpu.memory_space<vmem>>, vector<8x8xf32>
    %c0_1 = arith.constant 0 : index
    %c0_2 = arith.constant 0 : index
    %1 = vector.load %arg2[%c0_1, %c0_2] : memref<8x8xf32, #tpu.memory_space<vmem>>, vector<8x8xf32>
    %c0_3 = arith.constant 0 : index
    %c0_4 = arith.constant 0 : index
    %2 = vector.load %arg3[%c0_3, %c0_4] : memref<8x10xi32, #tpu.memory_space<vmem>>, vector<8x10xi32>
    %c0_5 = arith.constant 0 : index
    %c0_6 = arith.constant 0 : index
    %c0_7 = arith.constant 0 : index
    %3 = vector.load %arg4[%c0_5, %c0_6, %c0_7] : memref<8x10x1xi32, #tpu.memory_space<vmem>>, vector<8x10x1xi32>
    %4 = tpu.iota {dimensions = array<i32: 0>} : vector<8x10xi32>
    %5 = tpu.iota {dimensions = array<i32: 1>} : vector<10x8xi32>
    %6 = vector.extract_strided_slice %1 {offsets = [0, 0], sizes = [1, 8], strides = [1, 1]} : vector<8x8xf32> to vector<1x8xf32>
    %7 = vector.extract_strided_slice %2 {offsets = [0, 0], sizes = [1, 10], strides = [1, 1]} : vector<8x10xi32> to vector<1x10xi32>
    %8 = vector.extract_strided_slice %3 {offsets = [0, 0, 0], sizes = [1, 10, 1], strides = [1, 1, 1]} : vector<8x10x1xi32> to vector<1x10x1xi32>
    %9 = vector.shape_cast %8 : vector<1x10x1xi32> to vector<10x1xi32>
    %10 = vector.shape_cast %7 : vector<1x10xi32> to vector<1x10xi32>
    %11 = vector.broadcast %10 : vector<1x10xi32> to vector<8x10xi32>
    %12 = arith.cmpi eq, %11, %4 : vector<8x10xi32>
    %13 = arith.extui %12 : vector<8x10xi1> to vector<8x10xi32>
    %14 = arith.sitofp %13 : vector<8x10xi32> to vector<8x10xf32>
    %15 = arith.truncf %14 : vector<8x10xf32> to vector<8x10xbf16>
    %16 = arith.truncf %6 : vector<1x8xf32> to vector<1x8xbf16>
    %cst = arith.constant dense<0.000000e+00> : vector<1x10xf32>
    %17 = tpu.matmul %16, %15, %cst {dimension_numbers = #tpu.dot_dimension_numbers<[1], [0], [0], [1], [0, 0, 1, 1], [], []>} : vector<1x8xbf16>, vector<8x10xbf16>, vector<1x10xf32> -> vector<1x10xf32>
    %cst_8 = arith.constant 1.000000e+00 : f32
    %18 = vector.broadcast %cst_8 : f32 to vector<1x10xf32>
    %19 = arith.cmpf oeq, %17, %18 : vector<1x10xf32>
    %20 = arith.extui %19 : vector<1x10xi1> to vector<1x10xi32>
    %21 = arith.sitofp %20 : vector<1x10xi32> to vector<1x10xf32>
    %22 = arith.truncf %21 : vector<1x10xf32> to vector<1x10xbf16>
    %23 = vector.shape_cast %9 : vector<10x1xi32> to vector<10x1xi32>
    %24 = vector.broadcast %23 : vector<10x1xi32> to vector<10x8xi32>
    %25 = arith.cmpi eq, %24, %5 : vector<10x8xi32>
    %26 = arith.extui %25 : vector<10x8xi1> to vector<10x8xi32>
    %27 = arith.sitofp %26 : vector<10x8xi32> to vector<10x8xf32>
    %28 = arith.truncf %27 : vector<10x8xf32> to vector<10x8xbf16>
    %cst_9 = arith.constant dense<0.000000e+00> : vector<1x8xf32>
    %29 = tpu.matmul %22, %28, %cst_9 {dimension_numbers = #tpu.dot_dimension_numbers<[1], [0], [0], [1], [0, 0, 1, 1], [], []>} : vector<1x10xbf16>, vector<10x8xbf16>, vector<1x8xf32> -> vector<1x8xf32>
    %30 = vector.extract_strided_slice %1 {offsets = [1, 0], sizes = [1, 8], strides = [1, 1]} : vector<8x8xf32> to vector<1x8xf32>
    %31 = vector.extract_strided_slice %2 {offsets = [1, 0], sizes = [1, 10], strides = [1, 1]} : vector<8x10xi32> to vector<1x10xi32>
    %32 = vector.extract_strided_slice %3 {offsets = [1, 0, 0], sizes = [1, 10, 1], strides = [1, 1, 1]} : vector<8x10x1xi32> to vector<1x10x1xi32>
    %33 = vector.shape_cast %32 : vector<1x10x1xi32> to vector<10x1xi32>
    %34 = vector.shape_cast %31 : vector<1x10xi32> to vector<1x10xi32>
    %35 = vector.broadcast %34 : vector<1x10xi32> to vector<8x10xi32>
    %36 = arith.cmpi eq, %35, %4 : vector<8x10xi32>
    %37 = arith.extui %36 : vector<8x10xi1> to vector<8x10xi32>
    %38 = arith.sitofp %37 : vector<8x10xi32> to vector<8x10xf32>
    %39 = arith.truncf %38 : vector<8x10xf32> to vector<8x10xbf16>
    %40 = arith.truncf %30 : vector<1x8xf32> to vector<1x8xbf16>
    %cst_10 = arith.constant dense<0.000000e+00> : vector<1x10xf32>
    %41 = tpu.matmul %40, %39, %cst_10 {dimension_numbers = #tpu.dot_dimension_numbers<[1], [0], [0], [1], [0, 0, 1, 1], [], []>} : vector<1x8xbf16>, vector<8x10xbf16>, vector<1x10xf32> -> vector<1x10xf32>
    %cst_11 = arith.constant 1.000000e+00 : f32
    %42 = vector.broadcast %cst_11 : f32 to vector<1x10xf32>
    %43 = arith.cmpf oeq, %41, %42 : vector<1x10xf32>
    %44 = arith.extui %43 : vector<1x10xi1> to vector<1x10xi32>
    %45 = arith.sitofp %44 : vector<1x10xi32> to vector<1x10xf32>
    %46 = arith.truncf %45 : vector<1x10xf32> to vector<1x10xbf16>
    %47 = vector.shape_cast %33 : vector<10x1xi32> to vector<10x1xi32>
    %48 = vector.broadcast %47 : vector<10x1xi32> to vector<10x8xi32>
    %49 = arith.cmpi eq, %48, %5 : vector<10x8xi32>
    %50 = arith.extui %49 : vector<10x8xi1> to vector<10x8xi32>
    %51 = arith.sitofp %50 : vector<10x8xi32> to vector<10x8xf32>
    %52 = arith.truncf %51 : vector<10x8xf32> to vector<10x8xbf16>
    %cst_12 = arith.constant dense<0.000000e+00> : vector<1x8xf32>
    %53 = tpu.matmul %46, %52, %cst_12 {dimension_numbers = #tpu.dot_dimension_numbers<[1], [0], [0], [1], [0, 0, 1, 1], [], []>} : vector<1x10xbf16>, vector<10x8xbf16>, vector<1x8xf32> -> vector<1x8xf32>
    %54 = vector.extract_strided_slice %1 {offsets = [2, 0], sizes = [1, 8], strides = [1, 1]} : vector<8x8xf32> to vector<1x8xf32>
    %55 = vector.extract_strided_slice %2 {offsets = [2, 0], sizes = [1, 10], strides = [1, 1]} : vector<8x10xi32> to vector<1x10xi32>
    %56 = vector.extract_strided_slice %3 {offsets = [2, 0, 0], sizes = [1, 10, 1], strides = [1, 1, 1]} : vector<8x10x1xi32> to vector<1x10x1xi32>
    %57 = vector.shape_cast %56 : vector<1x10x1xi32> to vector<10x1xi32>
    %58 = vector.shape_cast %55 : vector<1x10xi32> to vector<1x10xi32>
    %59 = vector.broadcast %58 : vector<1x10xi32> to vector<8x10xi32>
    %60 = arith.cmpi eq, %59, %4 : vector<8x10xi32>
    %61 = arith.extui %60 : vector<8x10xi1> to vector<8x10xi32>
    %62 = arith.sitofp %61 : vector<8x10xi32> to vector<8x10xf32>
    %63 = arith.truncf %62 : vector<8x10xf32> to vector<8x10xbf16>
    %64 = arith.truncf %54 : vector<1x8xf32> to vector<1x8xbf16>
    %cst_13 = arith.constant dense<0.000000e+00> : vector<1x10xf32>
    %65 = tpu.matmul %64, %63, %cst_13 {dimension_numbers = #tpu.dot_dimension_numbers<[1], [0], [0], [1], [0, 0, 1, 1], [], []>} : vector<1x8xbf16>, vector<8x10xbf16>, vector<1x10xf32> -> vector<1x10xf32>
    %cst_14 = arith.constant 1.000000e+00 : f32
    %66 = vector.broadcast %cst_14 : f32 to vector<1x10xf32>
    %67 = arith.cmpf oeq, %65, %66 : vector<1x10xf32>
    %68 = arith.extui %67 : vector<1x10xi1> to vector<1x10xi32>
    %69 = arith.sitofp %68 : vector<1x10xi32> to vector<1x10xf32>
    %70 = arith.truncf %69 : vector<1x10xf32> to vector<1x10xbf16>
    %71 = vector.shape_cast %57 : vector<10x1xi32> to vector<10x1xi32>
    %72 = vector.broadcast %71 : vector<10x1xi32> to vector<10x8xi32>
    %73 = arith.cmpi eq, %72, %5 : vector<10x8xi32>
    %74 = arith.extui %73 : vector<10x8xi1> to vector<10x8xi32>
    %75 = arith.sitofp %74 : vector<10x8xi32> to vector<10x8xf32>
    %76 = arith.truncf %75 : vector<10x8xf32> to vector<10x8xbf16>
    %cst_15 = arith.constant dense<0.000000e+00> : vector<1x8xf32>
    %77 = tpu.matmul %70, %76, %cst_15 {dimension_numbers = #tpu.dot_dimension_numbers<[1], [0], [0], [1], [0, 0, 1, 1], [], []>} : vector<1x10xbf16>, vector<10x8xbf16>, vector<1x8xf32> -> vector<1x8xf32>
    %78 = vector.extract_strided_slice %1 {offsets = [3, 0], sizes = [1, 8], strides = [1, 1]} : vector<8x8xf32> to vector<1x8xf32>
    %79 = vector.extract_strided_slice %2 {offsets = [3, 0], sizes = [1, 10], strides = [1, 1]} : vector<8x10xi32> to vector<1x10xi32>
    %80 = vector.extract_strided_slice %3 {offsets = [3, 0, 0], sizes = [1, 10, 1], strides = [1, 1, 1]} : vector<8x10x1xi32> to vector<1x10x1xi32>
    %81 = vector.shape_cast %80 : vector<1x10x1xi32> to vector<10x1xi32>
    %82 = vector.shape_cast %79 : vector<1x10xi32> to vector<1x10xi32>
    %83 = vector.broadcast %82 : vector<1x10xi32> to vector<8x10xi32>
    %84 = arith.cmpi eq, %83, %4 : vector<8x10xi32>
    %85 = arith.extui %84 : vector<8x10xi1> to vector<8x10xi32>
    %86 = arith.sitofp %85 : vector<8x10xi32> to vector<8x10xf32>
    %87 = arith.truncf %86 : vector<8x10xf32> to vector<8x10xbf16>
    %88 = arith.truncf %78 : vector<1x8xf32> to vector<1x8xbf16>
    %cst_16 = arith.constant dense<0.000000e+00> : vector<1x10xf32>
    %89 = tpu.matmul %88, %87, %cst_16 {dimension_numbers = #tpu.dot_dimension_numbers<[1], [0], [0], [1], [0, 0, 1, 1], [], []>} : vector<1x8xbf16>, vector<8x10xbf16>, vector<1x10xf32> -> vector<1x10xf32>
    %cst_17 = arith.constant 1.000000e+00 : f32
    %90 = vector.broadcast %cst_17 : f32 to vector<1x10xf32>
    %91 = arith.cmpf oeq, %89, %90 : vector<1x10xf32>
    %92 = arith.extui %91 : vector<1x10xi1> to vector<1x10xi32>
    %93 = arith.sitofp %92 : vector<1x10xi32> to vector<1x10xf32>
    %94 = arith.truncf %93 : vector<1x10xf32> to vector<1x10xbf16>
    %95 = vector.shape_cast %81 : vector<10x1xi32> to vector<10x1xi32>
    %96 = vector.broadcast %95 : vector<10x1xi32> to vector<10x8xi32>
    %97 = arith.cmpi eq, %96, %5 : vector<10x8xi32>
    %98 = arith.extui %97 : vector<10x8xi1> to vector<10x8xi32>
    %99 = arith.sitofp %98 : vector<10x8xi32> to vector<10x8xf32>
    %100 = arith.truncf %99 : vector<10x8xf32> to vector<10x8xbf16>
    %cst_18 = arith.constant dense<0.000000e+00> : vector<1x8xf32>
    %101 = tpu.matmul %94, %100, %cst_18 {dimension_numbers = #tpu.dot_dimension_numbers<[1], [0], [0], [1], [0, 0, 1, 1], [], []>} : vector<1x10xbf16>, vector<10x8xbf16>, vector<1x8xf32> -> vector<1x8xf32>
    %102 = vector.extract_strided_slice %1 {offsets = [4, 0], sizes = [1, 8], strides = [1, 1]} : vector<8x8xf32> to vector<1x8xf32>
    %103 = vector.extract_strided_slice %2 {offsets = [4, 0], sizes = [1, 10], strides = [1, 1]} : vector<8x10xi32> to vector<1x10xi32>
    %104 = vector.extract_strided_slice %3 {offsets = [4, 0, 0], sizes = [1, 10, 1], strides = [1, 1, 1]} : vector<8x10x1xi32> to vector<1x10x1xi32>
    %105 = vector.shape_cast %104 : vector<1x10x1xi32> to vector<10x1xi32>
    %106 = vector.shape_cast %103 : vector<1x10xi32> to vector<1x10xi32>
    %107 = vector.broadcast %106 : vector<1x10xi32> to vector<8x10xi32>
    %108 = arith.cmpi eq, %107, %4 : vector<8x10xi32>
    %109 = arith.extui %108 : vector<8x10xi1> to vector<8x10xi32>
    %110 = arith.sitofp %109 : vector<8x10xi32> to vector<8x10xf32>
    %111 = arith.truncf %110 : vector<8x10xf32> to vector<8x10xbf16>
    %112 = arith.truncf %102 : vector<1x8xf32> to vector<1x8xbf16>
    %cst_19 = arith.constant dense<0.000000e+00> : vector<1x10xf32>
    %113 = tpu.matmul %112, %111, %cst_19 {dimension_numbers = #tpu.dot_dimension_numbers<[1], [0], [0], [1], [0, 0, 1, 1], [], []>} : vector<1x8xbf16>, vector<8x10xbf16>, vector<1x10xf32> -> vector<1x10xf32>
    %cst_20 = arith.constant 1.000000e+00 : f32
    %114 = vector.broadcast %cst_20 : f32 to vector<1x10xf32>
    %115 = arith.cmpf oeq, %113, %114 : vector<1x10xf32>
    %116 = arith.extui %115 : vector<1x10xi1> to vector<1x10xi32>
    %117 = arith.sitofp %116 : vector<1x10xi32> to vector<1x10xf32>
    %118 = arith.truncf %117 : vector<1x10xf32> to vector<1x10xbf16>
    %119 = vector.shape_cast %105 : vector<10x1xi32> to vector<10x1xi32>
    %120 = vector.broadcast %119 : vector<10x1xi32> to vector<10x8xi32>
    %121 = arith.cmpi eq, %120, %5 : vector<10x8xi32>
    %122 = arith.extui %121 : vector<10x8xi1> to vector<10x8xi32>
    %123 = arith.sitofp %122 : vector<10x8xi32> to vector<10x8xf32>
    %124 = arith.truncf %123 : vector<10x8xf32> to vector<10x8xbf16>
    %cst_21 = arith.constant dense<0.000000e+00> : vector<1x8xf32>
    %125 = tpu.matmul %118, %124, %cst_21 {dimension_numbers = #tpu.dot_dimension_numbers<[1], [0], [0], [1], [0, 0, 1, 1], [], []>} : vector<1x10xbf16>, vector<10x8xbf16>, vector<1x8xf32> -> vector<1x8xf32>
    %126 = vector.extract_strided_slice %1 {offsets = [5, 0], sizes = [1, 8], strides = [1, 1]} : vector<8x8xf32> to vector<1x8xf32>
    %127 = vector.extract_strided_slice %2 {offsets = [5, 0], sizes = [1, 10], strides = [1, 1]} : vector<8x10xi32> to vector<1x10xi32>
    %128 = vector.extract_strided_slice %3 {offsets = [5, 0, 0], sizes = [1, 10, 1], strides = [1, 1, 1]} : vector<8x10x1xi32> to vector<1x10x1xi32>
    %129 = vector.shape_cast %128 : vector<1x10x1xi32> to vector<10x1xi32>
    %130 = vector.shape_cast %127 : vector<1x10xi32> to vector<1x10xi32>
    %131 = vector.broadcast %130 : vector<1x10xi32> to vector<8x10xi32>
    %132 = arith.cmpi eq, %131, %4 : vector<8x10xi32>
    %133 = arith.extui %132 : vector<8x10xi1> to vector<8x10xi32>
    %134 = arith.sitofp %133 : vector<8x10xi32> to vector<8x10xf32>
    %135 = arith.truncf %134 : vector<8x10xf32> to vector<8x10xbf16>
    %136 = arith.truncf %126 : vector<1x8xf32> to vector<1x8xbf16>
    %cst_22 = arith.constant dense<0.000000e+00> : vector<1x10xf32>
    %137 = tpu.matmul %136, %135, %cst_22 {dimension_numbers = #tpu.dot_dimension_numbers<[1], [0], [0], [1], [0, 0, 1, 1], [], []>} : vector<1x8xbf16>, vector<8x10xbf16>, vector<1x10xf32> -> vector<1x10xf32>
    %cst_23 = arith.constant 1.000000e+00 : f32
    %138 = vector.broadcast %cst_23 : f32 to vector<1x10xf32>
    %139 = arith.cmpf oeq, %137, %138 : vector<1x10xf32>
    %140 = arith.extui %139 : vector<1x10xi1> to vector<1x10xi32>
    %141 = arith.sitofp %140 : vector<1x10xi32> to vector<1x10xf32>
    %142 = arith.truncf %141 : vector<1x10xf32> to vector<1x10xbf16>
    %143 = vector.shape_cast %129 : vector<10x1xi32> to vector<10x1xi32>
    %144 = vector.broadcast %143 : vector<10x1xi32> to vector<10x8xi32>
    %145 = arith.cmpi eq, %144, %5 : vector<10x8xi32>
    %146 = arith.extui %145 : vector<10x8xi1> to vector<10x8xi32>
    %147 = arith.sitofp %146 : vector<10x8xi32> to vector<10x8xf32>
    %148 = arith.truncf %147 : vector<10x8xf32> to vector<10x8xbf16>
    %cst_24 = arith.constant dense<0.000000e+00> : vector<1x8xf32>
    %149 = tpu.matmul %142, %148, %cst_24 {dimension_numbers = #tpu.dot_dimension_numbers<[1], [0], [0], [1], [0, 0, 1, 1], [], []>} : vector<1x10xbf16>, vector<10x8xbf16>, vector<1x8xf32> -> vector<1x8xf32>
    %150 = vector.extract_strided_slice %1 {offsets = [6, 0], sizes = [1, 8], strides = [1, 1]} : vector<8x8xf32> to vector<1x8xf32>
    %151 = vector.extract_strided_slice %2 {offsets = [6, 0], sizes = [1, 10], strides = [1, 1]} : vector<8x10xi32> to vector<1x10xi32>
    %152 = vector.extract_strided_slice %3 {offsets = [6, 0, 0], sizes = [1, 10, 1], strides = [1, 1, 1]} : vector<8x10x1xi32> to vector<1x10x1xi32>
    %153 = vector.shape_cast %152 : vector<1x10x1xi32> to vector<10x1xi32>
    %154 = vector.shape_cast %151 : vector<1x10xi32> to vector<1x10xi32>
    %155 = vector.broadcast %154 : vector<1x10xi32> to vector<8x10xi32>
    %156 = arith.cmpi eq, %155, %4 : vector<8x10xi32>
    %157 = arith.extui %156 : vector<8x10xi1> to vector<8x10xi32>
    %158 = arith.sitofp %157 : vector<8x10xi32> to vector<8x10xf32>
    %159 = arith.truncf %158 : vector<8x10xf32> to vector<8x10xbf16>
    %160 = arith.truncf %150 : vector<1x8xf32> to vector<1x8xbf16>
    %cst_25 = arith.constant dense<0.000000e+00> : vector<1x10xf32>
    %161 = tpu.matmul %160, %159, %cst_25 {dimension_numbers = #tpu.dot_dimension_numbers<[1], [0], [0], [1], [0, 0, 1, 1], [], []>} : vector<1x8xbf16>, vector<8x10xbf16>, vector<1x10xf32> -> vector<1x10xf32>
    %cst_26 = arith.constant 1.000000e+00 : f32
    %162 = vector.broadcast %cst_26 : f32 to vector<1x10xf32>
    %163 = arith.cmpf oeq, %161, %162 : vector<1x10xf32>
    %164 = arith.extui %163 : vector<1x10xi1> to vector<1x10xi32>
    %165 = arith.sitofp %164 : vector<1x10xi32> to vector<1x10xf32>
    %166 = arith.truncf %165 : vector<1x10xf32> to vector<1x10xbf16>
    %167 = vector.shape_cast %153 : vector<10x1xi32> to vector<10x1xi32>
    %168 = vector.broadcast %167 : vector<10x1xi32> to vector<10x8xi32>
    %169 = arith.cmpi eq, %168, %5 : vector<10x8xi32>
    %170 = arith.extui %169 : vector<10x8xi1> to vector<10x8xi32>
    %171 = arith.sitofp %170 : vector<10x8xi32> to vector<10x8xf32>
    %172 = arith.truncf %171 : vector<10x8xf32> to vector<10x8xbf16>
    %cst_27 = arith.constant dense<0.000000e+00> : vector<1x8xf32>
    %173 = tpu.matmul %166, %172, %cst_27 {dimension_numbers = #tpu.dot_dimension_numbers<[1], [0], [0], [1], [0, 0, 1, 1], [], []>} : vector<1x10xbf16>, vector<10x8xbf16>, vector<1x8xf32> -> vector<1x8xf32>
    %174 = vector.extract_strided_slice %1 {offsets = [7, 0], sizes = [1, 8], strides = [1, 1]} : vector<8x8xf32> to vector<1x8xf32>
    %175 = vector.extract_strided_slice %2 {offsets = [7, 0], sizes = [1, 10], strides = [1, 1]} : vector<8x10xi32> to vector<1x10xi32>
    %176 = vector.extract_strided_slice %3 {offsets = [7, 0, 0], sizes = [1, 10, 1], strides = [1, 1, 1]} : vector<8x10x1xi32> to vector<1x10x1xi32>
    %177 = vector.shape_cast %176 : vector<1x10x1xi32> to vector<10x1xi32>
    %178 = vector.shape_cast %175 : vector<1x10xi32> to vector<1x10xi32>
    %179 = vector.broadcast %178 : vector<1x10xi32> to vector<8x10xi32>
    %180 = arith.cmpi eq, %179, %4 : vector<8x10xi32>
    %181 = arith.extui %180 : vector<8x10xi1> to vector<8x10xi32>
    %182 = arith.sitofp %181 : vector<8x10xi32> to vector<8x10xf32>
    %183 = arith.truncf %182 : vector<8x10xf32> to vector<8x10xbf16>
    %184 = arith.truncf %174 : vector<1x8xf32> to vector<1x8xbf16>
    %cst_28 = arith.constant dense<0.000000e+00> : vector<1x10xf32>
    %185 = tpu.matmul %184, %183, %cst_28 {dimension_numbers = #tpu.dot_dimension_numbers<[1], [0], [0], [1], [0, 0, 1, 1], [], []>} : vector<1x8xbf16>, vector<8x10xbf16>, vector<1x10xf32> -> vector<1x10xf32>
    %cst_29 = arith.constant 1.000000e+00 : f32
    %186 = vector.broadcast %cst_29 : f32 to vector<1x10xf32>
    %187 = arith.cmpf oeq, %185, %186 : vector<1x10xf32>
    %188 = arith.extui %187 : vector<1x10xi1> to vector<1x10xi32>
    %189 = arith.sitofp %188 : vector<1x10xi32> to vector<1x10xf32>
    %190 = arith.truncf %189 : vector<1x10xf32> to vector<1x10xbf16>
    %191 = vector.shape_cast %177 : vector<10x1xi32> to vector<10x1xi32>
    %192 = vector.broadcast %191 : vector<10x1xi32> to vector<10x8xi32>
    %193 = arith.cmpi eq, %192, %5 : vector<10x8xi32>
    %194 = arith.extui %193 : vector<10x8xi1> to vector<10x8xi32>
    %195 = arith.sitofp %194 : vector<10x8xi32> to vector<10x8xf32>
    %196 = arith.truncf %195 : vector<10x8xf32> to vector<10x8xbf16>
    %cst_30 = arith.constant dense<0.000000e+00> : vector<1x8xf32>
    %197 = tpu.matmul %190, %196, %cst_30 {dimension_numbers = #tpu.dot_dimension_numbers<[1], [0], [0], [1], [0, 0, 1, 1], [], []>} : vector<1x10xbf16>, vector<10x8xbf16>, vector<1x8xf32> -> vector<1x8xf32>
    %198 = tpu.concatenate %29, %53, %77, %101, %125, %149, %173, %197 in 0 : vector<1x8xf32>, vector<1x8xf32>, vector<1x8xf32>, vector<1x8xf32>, vector<1x8xf32>, vector<1x8xf32>, vector<1x8xf32>, vector<1x8xf32> -> vector<8x8xf32>
    %cst_31 = arith.constant 5.000000e-01 : f32
    %199 = vector.broadcast %cst_31 : f32 to vector<8x8xf32>
    %200 = arith.cmpf ogt, %198, %199 : vector<8x8xf32>
    %201 = arith.extui %200 : vector<8x8xi1> to vector<8x8xi32>
    %202 = arith.sitofp %201 : vector<8x8xi32> to vector<8x8xf32>
    %cst_32 = arith.constant 0.000000e+00 : f32
    %203 = vector.broadcast %cst_32 : f32 to vector<8x8xf32>
    %204 = arith.maximumf %0, %203 : vector<8x8xf32>
    %205 = arith.mulf %0, %202 : vector<8x8xf32>
    %206 = arith.subf %204, %205 : vector<8x8xf32>
    %207 = math.absf %0 : vector<8x8xf32>
    %cst_33 = arith.constant 0.000000e+00 : f32
    %208 = vector.broadcast %cst_33 : f32 to vector<8x8xf32>
    %209 = arith.subf %208, %207 : vector<8x8xf32>
    %210 = math.exp %209 : vector<8x8xf32>
    %211 = math.log1p %210 : vector<8x8xf32>
    %212 = arith.addf %206, %211 : vector<8x8xf32>
    %cst_34 = arith.constant dense<0.000000e+00> : vector<8xf32>
    %213 = vector.multi_reduction <add>, %212, %cst_34 [1] : vector<8x8xf32> to vector<8xf32>
    %214 = vector.shape_cast %213 : vector<8xf32> to vector<8x1xf32>
    %cst_35 = arith.constant 1.250000e-01 : f32
    %215 = vector.broadcast %cst_35 : f32 to vector<8x1xf32>
    %216 = arith.mulf %214, %215 : vector<8x1xf32>
    %217 = vector.shape_cast %216 : vector<8x1xf32> to vector<8x1xf32>
    %218 = vector.broadcast %217 : vector<8x1xf32> to vector<8x128xf32>
    %c0_36 = arith.constant 0 : index
    %c0_37 = arith.constant 0 : index
    %219 = vector.load %arg5[%c0_36, %c0_37] : memref<8x128xf32, #tpu.memory_space<vmem>>, vector<8x128xf32>
    tpu.vector_store %arg5[%c0_36, %c0_37], %218 {strides = array<i32>} : memref<8x128xf32, #tpu.memory_space<vmem>>, vector<8x128xf32>,
    return
  }
  func.func @transform_0(%arg0: i32) -> (i32, i32) {
    %c0_i32 = arith.constant 0 : i32
    %c0_i32_0 = arith.constant 0 : i32
    return %arg0, %c0_i32 : i32, i32
  }
  func.func @transform_1(%arg0: i32) -> (i32, i32) {
    %c0_i32 = arith.constant 0 : i32
    %c0_i32_0 = arith.constant 0 : i32
    return %arg0, %c0_i32 : i32, i32
  }
  func.func @transform_2(%arg0: i32) -> (i32, i32) {
    %c0_i32 = arith.constant 0 : i32
    %c0_i32_0 = arith.constant 0 : i32
    return %arg0, %c0_i32 : i32, i32
  }
  func.func @transform_3(%arg0: i32) -> (i32, i32, i32) {
    %c0_i32 = arith.constant 0 : i32
    %c0_i32_0 = arith.constant 0 : i32
    %c0_i32_1 = arith.constant 0 : i32
    return %arg0, %c0_i32, %c0_i32_0 : i32, i32, i32
  }
  func.func @transform_4(%arg0: i32) -> (i32, i32) {
    %c0_i32 = arith.constant 0 : i32
    %c0_i32_0 = arith.constant 0 : i32
    return %arg0, %c0_i32 : i32, i32
  }
}

</mosaic_0001>

<bundles_post_ra>
// kernel: tpu_custom_call.1
= control target key start
LH: loop header
LB: loop body
LE: loop exit
PB: predicated region body
PF: predicated region fallthrough
CT: control target
= control target key end

     0   :  { %v38_v0 = vlaneseq  ;;  %v1275_v2 = vmov 0.0   ;;  %vm1276_vm0 = vmmov 0   ;;  %v1277_v5 = vmov 0   ;;  %s1550_s0 = inlined_call_operand.vmem [shape: f32[8,8], index: 0, kind: input, shape index: {}]   ;;  %s1551_s1 = inlined_call_operand.vmem [shape: f32[8,8], index: 1, kind: input, shape index: {}]   ;;  %s1552_s2 = inlined_call_operand.vmem [shape: s32[8,10], index: 2, kind: input, shape index: {}]   ;;  %s1553_s3 = inlined_call_operand.vmem [shape: s32[8,10,1], index: 3, kind: input, shape index: {}]   ;;  %s1554_s4 = inlined_call_operand.hbm [shape: f32[8,128], index: 4, kind: output, shape index: {}]  }
   0x1   :  { %v24_v1 = vld [vmem:[%s1553_s3 + $0x10] sm:$0xff]  ;;  %1145 = vmatprep.subr.bf16.mxu0 %v1275_v2  ;;  %1147 = vmatprep.mubr.msk.bf16.mxu0 %vm1276_vm0, %v1275_v2  ;;  %v22_v3 = vld [vmem:[%s1553_s3] sm:$0xff]  ;;  %v25_v7 = vld [vmem:[%s1553_s3 + $0x18] sm:$0x3] }
   0x2   :  { %v1314_v4 = vshrl.u32 %v38_v0, 7  ;;  %1246 = vset.pattern.permute.xlu1 %v1277_v5  ;;  %1245 = vset.pattern.permute.xlu0 %v1277_v5  ;;  %v1319_v6 = vld [vmem:[%s1552_s2] sm:$0xff]  ;;  %v23_v11 = vld [vmem:[%s1553_s3 + $0x8] sm:$0x3] }
   0x3   :  { %225 = vperm.xlu1 %1246, %v24_v1   ;;  %104 = vperm.xlu0 %1245, %v22_v3   ;;  %v27_v15 = vld [vmem:[%s1553_s3 + $0x28] sm:$0x3] }
   0x4   :  { %v44_v8 = vsub.s32 0, %v1314_v4  ;;  %v166_v9 = vsub.s32 1, %v1314_v4  ;;  %v285_v10 = vsub.s32 2, %v1314_v4  ;;  %1151 = vmatprep.subr.bf16.mxu1 %v1275_v2  ;;  %1153 = vmatprep.mubr.msk.bf16.mxu1 %vm1276_vm0, %v1275_v2 }
   0x6   :  { %v45_v12 = vrot.slane %v1319_v6, %v44_v8  ;;  %v167_v13 = vrot.slane %v1319_v6, %v166_v9  ;;  %v286_v14 = vrot.slane %v1319_v6, %v285_v10 }
   0x7   :  { %228 = vperm.xlu1 %1246, %v25_v7   ;;  %107 = vperm.xlu0 %1245, %v23_v11  }
   0x8   :  { %vm46_vm1 = vcmp.eq.s32.totalorder %v45_v12, %v1314_v4  ;;  %vm168_vm2 = vcmp.eq.s32.totalorder %v167_v13, %v1314_v4 }
   0x9   :  { %9 = vsyncpa [#allocation3], 0  ;;  %v1064_v16 = vsel %vm46_vm1, 1.0, %v1275_v2  ;;  %vm55_vm3 = vcmask 1043456   ;;  %v20_v17 = vld [vmem:[%s1551_s1] sm:$0xff]  ;;  %v1070_v18 = vsel %vm168_vm2, 1.0, %v1275_v2  ;;  %vm287_vm4 = vcmp.eq.s32.totalorder %v286_v14, %v1314_v4 }
   0xa   :  { %v26_v19 = vld [vmem:[%s1553_s3 + $0x20] sm:$0xff]  ;;  %v49_v20 = vpack.c.bf16 %v1064_v16, %v1064_v16  ;;  %v171_v21 = vpack.c.bf16 %v1070_v18, %v1070_v18  ;;  %v1350_v23 = vpack.c.bf16 %v20_v17, %v20_v17  ;;  %v404_v24 = vsub.s32 3, %v1314_v4  ;;  %v29_v25 = vld [vmem:[%s1553_s3 + $0x38] sm:$0x3]  ;;  %v28_v26 = vld [vmem:[%s1553_s3 + $0x30] sm:$0xff] }
   0xb   :  { %347 = vperm.xlu1 %1246, %v27_v15   ;;  %344 = vperm.xlu0 %1245, %v26_v19   ;;  %vm51_vm5 = vcmask 64512   ;;  %v1076_v28 = vsel %vm287_vm4, 1.0, %v1275_v2  ;;  %v31_v30 = vld [vmem:[%s1553_s3 + $0x48] sm:$0x3]  ;;  %v30_v31 = vld [vmem:[%s1553_s3 + $0x40] sm:$0xff]  ;;  %v522_v34 = vsub.s32 4, %v1314_v4 }
   0xc   :  { %v57_v22 = vsel %vm55_vm3, %v49_v20, 0  ;;  %v178_v27 = vsel %vm55_vm3, %v171_v21, 0  ;;  %v405_v29 = vrot.slane %v1319_v6, %v404_v24  ;;  %v290_v32 = vpack.c.bf16 %v1076_v28, %v1076_v28  ;;  %v33_v35 = vld [vmem:[%s1553_s3 + $0x58] sm:$0x3]  ;;  %v32_v36 = vld [vmem:[%s1553_s3 + $0x50] sm:$0xff]  ;;  %v34_v41 = vld [vmem:[%s1553_s3 + $0x60] sm:$0xff] }
   0xd   :  { %1146 = vmatpush3.bf16.msra.mxu0 %v57_v22  ;;  %v1376_v33 = vshrl.u32 %v1350_v23, 16  ;;  %v523_v39 = vrot.slane %v1319_v6, %v522_v34  ;;  %v35_v40 = vld [vmem:[%s1553_s3 + $0x68] sm:$0x3]  ;;  %v292_v43 = vrot.slane %v1350_v23, 1  ;;  %v640_v44 = vsub.s32 5, %v1314_v4  ;;  %v36_v46 = vld [vmem:[%s1553_s3 + $0x70] sm:$0xff] }
   0xe   :  { %1157 = vmatprep.subr.bf16.mxu0 %v1275_v2  ;;  %vm406_vm6 = vcmp.eq.s32.totalorder %v405_v29, %v1314_v4  ;;  %v297_v37 = vsel %vm55_vm3, %v290_v32, 0  ;;  %v37_v45 = vld [vmem:[%s1553_s3 + $0x78] sm:$0x3]  ;;  %v758_v52 = vsub.s32 6, %v1314_v4  ;;  %v528_v57 = vrot.slane %v1350_v23, 2 }
   0xf   :  { %465 = vperm.xlu1 %1246, %v29_v25   ;;  %462 = vperm.xlu0 %1245, %v28_v26   ;;  %v1082_v38 = vsel %vm406_vm6, 1.0, %v1275_v2  ;;  %vm524_vm7 = vcmp.eq.s32.totalorder %v523_v39, %v1314_v4  ;;  %v641_v49 = vrot.slane %v1319_v6, %v640_v44  ;;  %v410_v51 = vrot.slane %v1376_v33, 1 }
  0x10   :  { %1148 = vmatmul.mubr.msk.bf16.vlgmr.msra.gmra.mrb[0].mxu0 %vm51_vm5, %v1350_v23  ;;  %v409_v42 = vpack.c.bf16 %v1082_v38, %v1082_v38  ;;  %v1088_v48 = vsel %vm524_vm7, 1.0, %v1275_v2  ;;  %v759_v55 = vrot.slane %v1319_v6, %v758_v52  ;;  %v876_v58 = vsub.s32 7, %v1314_v4 }
  0x11   :  { %1158 = vmatpush3.bf16.msra.mxu0 %v178_v27  ;;  %1159 = vmatprep.mubr.msk.bf16.mxu0 %vm1276_vm0, %v1275_v2  ;;  %v527_v50 = vpack.c.bf16 %v1088_v48, %v1088_v48  ;;  %vm642_vm8 = vcmp.eq.s32.totalorder %v641_v49, %v1314_v4  ;;  %v646_v63 = vrot.slane %v1376_v33, 2  ;;  %v1452_v8 = vand.u32 127, %v38_v0 }
  0x12   :  { %1169 = vmatprep.subr.bf16.mxu0 %v1275_v2  ;;  %v415_v47 = vsel %vm55_vm3, %v409_v42, 0  ;;  %v1094_v54 = vsel %vm642_vm8, 1.0, %v1275_v2  ;;  %vm760_vm9 = vcmp.eq.s32.totalorder %v759_v55, %v1314_v4  ;;  %v877_v61 = vrot.slane %v1319_v6, %v876_v58 }
  0x13   :  { %583 = vperm.xlu1 %1246, %v31_v30   ;;  %580 = vperm.xlu0 %1245, %v30_v31   ;;  %v533_v53 = vsel %vm55_vm3, %v527_v50, 0  ;;  %v645_v56 = vpack.c.bf16 %v1094_v54, %v1094_v54  ;;  %v1100_v60 = vsel %vm760_vm9, 1.0, %v1275_v2  ;;  %v764_v6 = vrot.slane %v1350_v23, 3 }
  0x14   :  { %v763_v62 = vpack.c.bf16 %v1100_v60, %v1100_v60  ;;  %vm878_vm10 = vcmp.eq.s32.totalorder %v877_v61, %v1314_v4  ;;  %v882_v4 = vrot.slane %v1376_v33, 3  ;;  %vm120_vm13 = vcmask 1044480  }
  0x15   :  { %v651_v59 = vsel %vm55_vm3, %v645_v56, 0  ;;  %v1106_v3 = vsel %vm878_vm10, 1.0, %v1275_v2  ;;  %vm116_vm2 = vcmask 80896  }
  0x16   :  { %v769_v1 = vsel %vm55_vm3, %v763_v62, 0  ;;  %v881_v5 = vpack.c.bf16 %v1106_v3, %v1106_v3 }
  0x17   :  { %701 = vperm.xlu1 %1246, %v33_v35   ;;  %698 = vperm.xlu0 %1245, %v32_v36  }
  0x18   :  { %1160 = vmatmul.mubr.msk.bf16.vlgmr.msra.gmra.mrb[4].mxu0 %vm51_vm5, %v1376_v33  ;;  %v887_v7 = vsel %vm55_vm3, %v881_v5, 0 }
  0x19   :  { %1170 = vmatpush3.bf16.msra.mxu0 %v297_v37  ;;  %1171 = vmatprep.mubr.msk.bf16.mxu0 %vm1276_vm0, %v1275_v2 }
  0x1a   :  { %1181 = vmatprep.subr.bf16.mxu0 %v1275_v2 }
  0x1b   :  { %819 = vperm.xlu1 %1246, %v35_v40   ;;  %816 = vperm.xlu0 %1245, %v34_v41  }
  0x1f   :  { %937 = vperm.xlu1 %1246, %v37_v45   ;;  %934 = vperm.xlu0 %1245, %v36_v46  }
  0x20   :  { %1172 = vmatmul.mubr.msk.bf16.vlgmr.msra.gmra.mrb[8].mxu0 %vm51_vm5, %v292_v43 }
  0x21   :  { %1182 = vmatpush3.bf16.msra.mxu0 %v415_v47  ;;  %1183 = vmatprep.mubr.msk.bf16.mxu0 %vm1276_vm0, %v1275_v2 }
  0x22   :  { %1193 = vmatprep.subr.bf16.mxu0 %v1275_v2 }
  0x28   :  { %1184 = vmatmul.mubr.msk.bf16.vlgmr.msra.gmra.mrb[12].mxu0 %vm51_vm5, %v410_v51 }
  0x29   :  { %1194 = vmatpush3.bf16.msra.mxu0 %v533_v53  ;;  %1195 = vmatprep.mubr.msk.bf16.mxu0 %vm1276_vm0, %v1275_v2 }
  0x2a   :  { %1205 = vmatprep.subr.bf16.mxu0 %v1275_v2 }
  0x30   :  { %1196 = vmatmul.mubr.msk.bf16.vlgmr.msra.gmra.mrb[16].mxu0 %vm51_vm5, %v528_v57 }
  0x31   :  { %1206 = vmatpush3.bf16.msra.mxu0 %v651_v59  ;;  %1207 = vmatprep.mubr.msk.bf16.mxu0 %vm1276_vm0, %v1275_v2 }
  0x32   :  { %1217 = vmatprep.subr.bf16.mxu0 %v1275_v2 }
  0x38   :  { %1208 = vmatmul.mubr.msk.bf16.vlgmr.msra.gmra.mrb[20].mxu0 %vm51_vm5, %v646_v63 }
  0x39   :  { %1218 = vmatpush3.bf16.msra.mxu0 %v769_v1  ;;  %1219 = vmatprep.mubr.msk.bf16.mxu0 %vm1276_vm0, %v1275_v2 }
  0x3a   :  { %1229 = vmatprep.subr.bf16.mxu0 %v1275_v2 }
  0x40   :  { %1220 = vmatmul.mubr.msk.bf16.vlgmr.msra.gmra.mrb[24].mxu0 %vm51_vm5, %v764_v6 }
  0x41   :  { %1230 = vmatpush3.bf16.msra.mxu0 %v887_v7  ;;  %1231 = vmatprep.mubr.msk.bf16.mxu0 %vm1276_vm0, %v1275_v2 }
  0x48   :  { %1232 = vmatmul.mubr.msk.bf16.vlgmr.msra.gmra.mrb[28].mxu0 %vm51_vm5, %v882_v4 }
  0x82   :  { %v105_v9 = vpop.permute.xlu0 %104  ;;  %v226_v15 = vpop.permute.xlu1 %225 }
  0x83   :  { %vm109_vm11 = vcmp.eq.s32.totalorder %v105_v9, %v1452_v8  ;;  %vm230_vm14 = vcmp.eq.s32.totalorder %v226_v15, %v1452_v8 }
  0x84   :  { %v1067_v10 = vsel %vm109_vm11, 1.0, %v1275_v2  ;;  %v1073_v16 = vsel %vm230_vm14, 1.0, %v1275_v2 }
  0x86   :  { %v108_v11 = vpop.permute.xlu0 %107  ;;  %v229_v0 = vpop.permute.xlu1 %228 }
  0x87   :  { %vm110_vm12 = vcmp.eq.s32.totalorder %v108_v11, %v1452_v8  ;;  %vm231_vm15 = vcmp.eq.s32.totalorder %v229_v0, %v1452_v8 }
  0x88   :  { %v1068_v12 = vsel %vm110_vm12, 1.0, %v1275_v2  ;;  %v1074_v17 = vsel %vm231_vm15, 1.0, %v1275_v2 }
  0x89   :  { %v115_v13 = vpack.c.bf16 %v1068_v12, %v1067_v10  ;;  %v236_v18 = vpack.c.bf16 %v1074_v17, %v1073_v16 }
  0x8a   :  { %v348_v20 = vpop.permute.xlu1 %347  ;;  %v345_v22 = vpop.permute.xlu0 %344 }
  0x8b   :  { %v122_v14 = vsel %vm120_vm13, %v115_v13, 0  ;;  %vm350_vm4 = vcmp.eq.s32.totalorder %v348_v20, %v1452_v8  ;;  %vm349_vm6 = vcmp.eq.s32.totalorder %v345_v22, %v1452_v8  ;;  %v241_v27 = vsel %vm120_vm13, %v236_v18, 0 }
  0x8c   :  { %1152 = vmatpush3.bf16.msra.mxu1 %v122_v14  ;;  %v1080_v28 = vsel %vm350_vm4, 1.0, %v1275_v2  ;;  %v1079_v29 = vsel %vm349_vm6, 1.0, %v1275_v2 }
  0x8d   :  { %1163 = vmatprep.subr.bf16.mxu1 %v1275_v2  ;;  %v355_v31 = vpack.c.bf16 %v1080_v28, %v1079_v29 }
  0x8e   :  { %v466_v32 = vpop.permute.xlu1 %465  ;;  %v463_v34 = vpop.permute.xlu0 %462 }
  0x8f   :  { %vm468_vm8 = vcmp.eq.s32.totalorder %v466_v32, %v1452_v8  ;;  %vm467_vm9 = vcmp.eq.s32.totalorder %v463_v34, %v1452_v8  ;;  %v360_v39 = vsel %vm120_vm13, %v355_v31, 0 }
  0x90   :  { %v1086_v40 = vsel %vm468_vm8, 1.0, %v1275_v2  ;;  %v1085_v41 = vsel %vm467_vm9, 1.0, %v1275_v2 }
  0x91   :  { %v473_v43 = vpack.c.bf16 %v1086_v40, %v1085_v41 }
  0x92   :  { %v584_v44 = vpop.permute.xlu1 %583  ;;  %v581_v46 = vpop.permute.xlu0 %580 }
  0x93   :  { %vm586_vm11 = vcmp.eq.s32.totalorder %v584_v44, %v1452_v8  ;;  %vm585_vm12 = vcmp.eq.s32.totalorder %v581_v46, %v1452_v8  ;;  %v478_v51 = vsel %vm120_vm13, %v473_v43, 0 }
  0x94   :  { %v1092_v52 = vsel %vm586_vm11, 1.0, %v1275_v2  ;;  %v1091_v53 = vsel %vm585_vm12, 1.0, %v1275_v2 }
  0x95   :  { %v591_v55 = vpack.c.bf16 %v1092_v52, %v1091_v53 }
  0x96   :  { %v702_v56 = vpop.permute.xlu1 %701  ;;  %v699_v58 = vpop.permute.xlu0 %698 }
  0x97   :  { %vm704_vm15 = vcmp.eq.s32.totalorder %v702_v56, %v1452_v8  ;;  %v596_v63 = vsel %vm120_vm13, %v591_v55, 0 }
  0x98   :  { %v1098_v1 = vsel %vm704_vm15, 1.0, %v1275_v2  ;;  %vm1021_vm15 = vcmask 1045504  }
  0x9a   :  { %v820_v7 = vpop.permute.xlu1 %819  ;;  %v817_v9 = vpop.permute.xlu0 %816 }
  0x9b   :  { %vm822_vm6 = vcmp.eq.s32.totalorder %v820_v7, %v1452_v8 }
  0x9c   :  { %v1104_v15 = vsel %vm822_vm6, 1.0, %v1275_v2 }
  0x9e   :  { %v938_v16 = vpop.permute.xlu1 %937  ;;  %v935_v17 = vpop.permute.xlu0 %934 }
  0x9f   :  { %vm940_vm9 = vcmp.eq.s32.totalorder %v938_v16, %v1452_v8 }
  0xe3   :  { %v93_v19 = vpop.f32.mrb[0].mxu0 }
  0xe4   :  { %vm99_vm1 = vcmp.eq.f32.partialorder %v93_v19, 1.0  ;;  %v1149_v21 = vpop.f32.mrb[1].mxu0 }
  0xe5   :  { %v1066_v23 = vsel %vm99_vm1, 1.0, %v1275_v2  ;;  %v96_v24 = vpop.f32.mrb[2].mxu0  ;;  %vm703_vm1 = vcmp.eq.s32.totalorder %v699_v58, %v1452_v8 }
  0xe6   :  { %v102_v25 = vpack.c.bf16 %v1066_v23, %v1066_v23  ;;  %v1150_v26 = vpop.f32.mrb[3].mxu0  ;;  %v1097_v3 = vsel %vm703_vm1, 1.0, %v1275_v2 }
  0xe7   :  { %v709_v6 = vpack.c.bf16 %v1098_v1, %v1097_v3  ;;  %v1110_v26 = vsel %vm940_vm9, 1.0, %v1275_v2 }
  0xe8   :  { %1154 = vmatmul.mubr.msk.bf16.vlgmr.msra.gmra.mrb[0].mxu1 %vm116_vm2, %v102_v25 }
  0xe9   :  { %1164 = vmatpush3.bf16.msra.mxu1 %v241_v27  ;;  %1165 = vmatprep.mubr.msk.bf16.mxu1 %vm1276_vm0, %v1275_v2  ;;  %v714_v14 = vsel %vm120_vm13, %v709_v6, 0 }
  0xea   :  { %1175 = vmatprep.subr.bf16.mxu1 %v1275_v2 }
  0xeb   :  { %v214_v30 = vpop.f32.mrb[4].mxu0 }
  0xec   :  { %vm220_vm7 = vcmp.eq.f32.partialorder %v214_v30, 1.0  ;;  %v1161_v33 = vpop.f32.mrb[5].mxu0 }
  0xed   :  { %v1072_v35 = vsel %vm220_vm7, 1.0, %v1275_v2  ;;  %v217_v36 = vpop.f32.mrb[6].mxu0  ;;  %vm821_vm7 = vcmp.eq.s32.totalorder %v817_v9, %v1452_v8 }
  0xee   :  { %v223_v37 = vpack.c.bf16 %v1072_v35, %v1072_v35  ;;  %v1162_v38 = vpop.f32.mrb[7].mxu0  ;;  %v1103_v0 = vsel %vm821_vm7, 1.0, %v1275_v2 }
  0xef   :  { %v827_v19 = vpack.c.bf16 %v1104_v15, %v1103_v0 }
  0xf0   :  { %1166 = vmatmul.mubr.msk.bf16.vlgmr.msra.gmra.mrb[4].mxu1 %vm116_vm2, %v223_v37 }
  0xf1   :  { %1176 = vmatpush3.bf16.msra.mxu1 %v360_v39  ;;  %1177 = vmatprep.mubr.msk.bf16.mxu1 %vm1276_vm0, %v1275_v2  ;;  %v832_v25 = vsel %vm120_vm13, %v827_v19, 0 }
  0xf2   :  { %1187 = vmatprep.subr.bf16.mxu1 %v1275_v2 }
  0xf3   :  { %v333_v42 = vpop.f32.mrb[8].mxu0 }
  0xf4   :  { %vm339_vm10 = vcmp.eq.f32.partialorder %v333_v42, 1.0  ;;  %v1173_v45 = vpop.f32.mrb[9].mxu0 }
  0xf5   :  { %v1078_v47 = vsel %vm339_vm10, 1.0, %v1275_v2  ;;  %v336_v48 = vpop.f32.mrb[10].mxu0  ;;  %vm939_vm10 = vcmp.eq.s32.totalorder %v935_v17, %v1452_v8 }
  0xf6   :  { %v342_v49 = vpack.c.bf16 %v1078_v47, %v1078_v47  ;;  %v1174_v50 = vpop.f32.mrb[11].mxu0  ;;  %v1109_v27 = vsel %vm939_vm10, 1.0, %v1275_v2 }
  0xf7   :  { %v945_v29 = vpack.c.bf16 %v1110_v26, %v1109_v27 }
  0xf8   :  { %1178 = vmatmul.mubr.msk.bf16.vlgmr.msra.gmra.mrb[8].mxu1 %vm116_vm2, %v342_v49 }
  0xf9   :  { %1188 = vmatpush3.bf16.msra.mxu1 %v478_v51  ;;  %1189 = vmatprep.mubr.msk.bf16.mxu1 %vm1276_vm0, %v1275_v2  ;;  %v950_v34 = vsel %vm120_vm13, %v945_v29, 0  ;;  %v19_v51 = vld [vmem:[%s1550_s0] sm:$0xff]  ;;  %s1278_s0 = smov [#allocation2]  }
  0xfa   :  { %1199 = vmatprep.subr.bf16.mxu1 %v1275_v2  ;;  %v1031_v55 = vand.u32 2147483647, %v19_v51  ;;  %s1056_s24 = sshll.u32 %s1278_s0, 4  ;;  %s1057_s24 = int_to_ptr.vmem [resolvable:$true] %s1056_s24 }
  0xfb   :  { %v451_v54 = vpop.f32.mrb[12].mxu0  ;;  %s1251_s2 = scalar_lea.vmem %s1057_s24, 128  ;;  %p1256_p1 = scmp.lt.s32.totalorder %s1057_s24, %s1057_s24 }
  0xfc   :  { %vm457_vm14 = vcmp.eq.f32.partialorder %v451_v54, 1.0  ;;  %v1185_v57 = vpop.f32.mrb[13].mxu0  ;;  %p1252_p0 = scmp.ne.s32.totalorder %s1057_s24, %s1251_s2  ;;  %p1257_p2 = scmp.lt.s32.totalorder %s1251_s2, %s1251_s2 }
  0xfd   :  { %v1084_v59 = vsel %vm457_vm14, 1.0, %v1275_v2  ;;  %v454_v60 = vpop.f32.mrb[14].mxu0  ;;  %vm1013_vm14 = vcmask 1040384  }
  0xfe   :  { %v460_v61 = vpack.c.bf16 %v1084_v59, %v1084_v59  ;;  %v1186_v62 = vpop.f32.mrb[15].mxu0  ;;  %v1032_v59 = vsub.f32 0.0, %v1031_v55  ;;  %p1258_p3 = por %p1257_p2, %p1256_p1 }
 0x100   :  { %1190 = vmatmul.mubr.msk.bf16.vlgmr.msra.gmra.mrb[12].mxu1 %vm116_vm2, %v460_v61  ;;  %p1259_p4 = pnand %p1258_p3, %p1252_p0 }
 0x101   :  { %1200 = vmatpush3.bf16.msra.mxu1 %v596_v63  ;;  %1201 = vmatprep.mubr.msk.bf16.mxu1 %vm1276_vm0, %v1275_v2  ;;  %v1033_v63 = vmul.f32 1.442695, %v1032_v59 }
 0x102   :  { %1211 = vmatprep.subr.bf16.mxu1 %v1275_v2 }
 0x103   :  { %v569_v5 = vpop.f32.mrb[16].mxu0  ;;  %1247 = vpow2.f32 %v1033_v63 }
 0x104   :  { %vm575_vm4 = vcmp.eq.f32.partialorder %v569_v5, 1.0  ;;  %v1197_v4 = vpop.f32.mrb[17].mxu0 }
 0x105   :  { %v1090_v10 = vsel %vm575_vm4, 1.0, %v1275_v2  ;;  %v572_v11 = vpop.f32.mrb[18].mxu0 }
 0x106   :  { %v578_v12 = vpack.c.bf16 %v1090_v10, %v1090_v10  ;;  %v1198_v13 = vpop.f32.mrb[19].mxu0 }
 0x108   :  { %1202 = vmatmul.mubr.msk.bf16.vlgmr.msra.gmra.mrb[16].mxu1 %vm116_vm2, %v578_v12 }
 0x109   :  { %1212 = vmatpush3.bf16.msra.mxu1 %v714_v14  ;;  %1213 = vmatprep.mubr.msk.bf16.mxu1 %vm1276_vm0, %v1275_v2 }
 0x10a   :  { %1223 = vmatprep.subr.bf16.mxu1 %v1275_v2 }
 0x10b   :  { %v687_v18 = vpop.f32.mrb[20].mxu0 }
 0x10c   :  { %vm693_vm8 = vcmp.eq.f32.partialorder %v687_v18, 1.0  ;;  %v1209_v20 = vpop.f32.mrb[21].mxu0 }
 0x10d   :  { %v1096_v21 = vsel %vm693_vm8, 1.0, %v1275_v2  ;;  %v690_v22 = vpop.f32.mrb[22].mxu0  ;;  %v1248_v12 = vpop.eup %1247 }
 0x10e   :  { %v696_v23 = vpack.c.bf16 %v1096_v21, %v1096_v21  ;;  %v1210_v24 = vpop.f32.mrb[23].mxu0  ;;  %v1035_v16 = vadd.f32 1.0, %v1248_v12  ;;  %v1041_v29 = vand.u32 2147483647, %v1248_v12 }
 0x110   :  { %1214 = vmatmul.mubr.msk.bf16.vlgmr.msra.gmra.mrb[20].mxu1 %vm116_vm2, %v696_v23  ;;  %1249 = vlog2.f32 %v1035_v16  ;;  %vm1042_vm1 = vcmp.lt.f32.partialorder %v1041_v29, 0.0004427343 }
 0x111   :  { %1224 = vmatpush3.bf16.msra.mxu1 %v832_v25  ;;  %1225 = vmatprep.mubr.msk.bf16.mxu1 %vm1276_vm0, %v1275_v2  ;;  %v1038_v25 = vmul.f32 -0.5, %v1248_v12 }
 0x112   :  { %1235 = vmatprep.subr.bf16.mxu1 %v1275_v2 }
 0x113   :  { %v805_v28 = vpop.f32.mrb[24].mxu0  ;;  %v1039_v26 = vadd.f32 1.0, %v1038_v25 }
 0x114   :  { %vm811_vm11 = vcmp.eq.f32.partialorder %v805_v28, 1.0  ;;  %v1221_v8 = vpop.f32.mrb[25].mxu0 }
 0x115   :  { %v1102_v30 = vsel %vm811_vm11, 1.0, %v1275_v2  ;;  %v808_v31 = vpop.f32.mrb[26].mxu0 }
 0x116   :  { %v814_v32 = vpack.c.bf16 %v1102_v30, %v1102_v30  ;;  %v1222_v33 = vpop.f32.mrb[27].mxu0 }
 0x118   :  { %1226 = vmatmul.mubr.msk.bf16.vlgmr.msra.gmra.mrb[24].mxu1 %vm116_vm2, %v814_v32 }
 0x119   :  { %1236 = vmatpush3.bf16.msra.mxu1 %v950_v34  ;;  %1237 = vmatprep.mubr.msk.bf16.mxu1 %vm1276_vm0, %v1275_v2  ;;  %vm1015_vm0 = vcmask 1041408  }
 0x11a   :  { %v1250_v27 = vpop.eup %1249 }
 0x11b   :  { %v923_v35 = vpop.f32.mrb[28].mxu0  ;;  %v1037_v34 = vmul.f32 0.6931472, %v1250_v27 }
 0x11c   :  { %vm929_vm12 = vcmp.eq.f32.partialorder %v923_v35, 1.0  ;;  %v1233_v36 = vpop.f32.mrb[29].mxu0  ;;  %v1040_v35 = vmul.f32 %v1248_v12, %v1039_v26 }
 0x11d   :  { %v1108_v37 = vsel %vm929_vm12, 1.0, %v1275_v2  ;;  %v926_v38 = vpop.f32.mrb[30].mxu0  ;;  %v1028_v36 = vmax.f32 %v19_v51, 0.0 }
 0x11e   :  { %v932_v39 = vpack.c.bf16 %v1108_v37, %v1108_v37  ;;  %v1234_v40 = vpop.f32.mrb[31].mxu0 }
 0x120   :  { %1238 = vmatmul.mubr.msk.bf16.vlgmr.msra.gmra.mrb[28].mxu1 %vm116_vm2, %v932_v39  ;;  %vm1017_vm2 = vcmask 1042432   ;;  %v1043_v39 = vsel %vm1042_vm1, %v1040_v35, %v1037_v34 }
 0x1bb   :  { %v158_v41 = vpop.f32.mrb[0].mxu1 }
 0x1bc   :  { %v1155_v42 = vpop.f32.mrb[1].mxu1 }
 0x1bd   :  { %v161_v43 = vpop.f32.mrb[2].mxu1 }
 0x1be   :  { %v1156_v44 = vpop.f32.mrb[3].mxu1 }
 0x1c3   :  { %v277_v45 = vpop.f32.mrb[4].mxu1 }
 0x1c4   :  { %v993_v46 = vrot.slane %v277_v45, 7  ;;  %v1167_v47 = vpop.f32.mrb[5].mxu1 }
 0x1c5   :  { %v280_v48 = vpop.f32.mrb[6].mxu1 }
 0x1c6   :  { %v1014_v49 = vsel %vm1013_vm14, %v158_v41, %v993_v46  ;;  %v1168_v50 = vpop.f32.mrb[7].mxu1 }
 0x1cb   :  { %v396_v52 = vpop.f32.mrb[8].mxu1 }
 0x1cc   :  { %v996_v53 = vrot.slane %v396_v52, 6  ;;  %v1179_v54 = vpop.f32.mrb[9].mxu1 }
 0x1cd   :  { %v399_v56 = vpop.f32.mrb[10].mxu1 }
 0x1ce   :  { %v1016_v57 = vsel %vm1015_vm0, %v1014_v49, %v996_v53  ;;  %v1180_v58 = vpop.f32.mrb[11].mxu1 }
 0x1d3   :  { %v514_v60 = vpop.f32.mrb[12].mxu1 }
 0x1d4   :  { %v999_v61 = vrot.slane %v514_v60, 5  ;;  %v1191_v62 = vpop.f32.mrb[13].mxu1 }
 0x1d5   :  { %v517_v1 = vpop.f32.mrb[14].mxu1 }
 0x1d6   :  { %v1018_v3 = vsel %vm1017_vm2, %v1016_v57, %v999_v61  ;;  %v1192_v5 = vpop.f32.mrb[15].mxu1 }
 0x1db   :  { %v632_v6 = vpop.f32.mrb[16].mxu1 }
 0x1dc   :  { %v1002_v7 = vrot.slane %v632_v6, 4  ;;  %v1203_v4 = vpop.f32.mrb[17].mxu1 }
 0x1dd   :  { %v635_v9 = vpop.f32.mrb[18].mxu1 }
 0x1de   :  { %v1019_v10 = vsel %vm55_vm3, %v1018_v3, %v1002_v7  ;;  %v1204_v11 = vpop.f32.mrb[19].mxu1  ;;  %vm1023_vm3 = vcmask 1046528  }
 0x1e3   :  { %v750_v13 = vpop.f32.mrb[20].mxu1 }
 0x1e4   :  { %v1005_v14 = vrot.slane %v750_v13, 3  ;;  %v1215_v15 = vpop.f32.mrb[21].mxu1 }
 0x1e5   :  { %v753_v0 = vpop.f32.mrb[22].mxu1 }
 0x1e6   :  { %v1020_v17 = vsel %vm120_vm13, %v1019_v10, %v1005_v14  ;;  %v1216_v18 = vpop.f32.mrb[23].mxu1 }
 0x1eb   :  { %v868_v19 = vpop.f32.mrb[24].mxu1 }
 0x1ec   :  { %v1008_v20 = vrot.slane %v868_v19, 2  ;;  %v1227_v21 = vpop.f32.mrb[25].mxu1 }
 0x1ed   :  { %v871_v22 = vpop.f32.mrb[26].mxu1 }
 0x1ee   :  { %v1022_v23 = vsel %vm1021_vm15, %v1020_v17, %v1008_v20  ;;  %v1228_v24 = vpop.f32.mrb[27].mxu1 }
 0x1f3   :  { %v986_v28 = vpop.f32.mrb[28].mxu1 }
 0x1f4   :  { %v1011_v8 = vrot.slane %v986_v28, 1  ;;  %v1239_v30 = vpop.f32.mrb[29].mxu1 }
 0x1f5   :  { %v989_v31 = vpop.f32.mrb[30].mxu1 }
 0x1f6   :  { %v1024_v32 = vsel %vm1023_vm3, %v1022_v23, %v1011_v8  ;;  %v1240_v33 = vpop.f32.mrb[31].mxu1 }
 0x1f7   :  { %vm1025_vm13 = vcmp.gt.f32.partialorder %v1024_v32, 0.5 }
 0x1f8   :  { %v1112_v37 = vsel %vm1025_vm13, 1.0, %v1275_v2 }
 0x1f9   :  { %v1029_v38 = vmul.f32 %v1112_v37, %v19_v51 }
 0x1fb   :  { %v1030_v40 = vsub.f32 %v1028_v36, %v1029_v38 }
 0x1fd   :  { %v1044_v41 = vadd.f32 %v1043_v39, %v1030_v40 }
 0x1ff   :  { %v1045_v42 = vsel %vm51_vm5, %v1044_v41, 0.0 }
 0x200   :  { %1046 = vadd.xlane.f32.xlu0 %v1045_v42 }
 0x28d   :  { %v1047_v43 = vpop.xlane.xlu0 %1046 }
 0x28e   :  { %v1048_v44 = vmul.f32 0.125, %v1047_v43 }
 0x290   :  { %1049 = vst [vmem:[#allocation2] sm:$0xff] %v1048_v44 }
 0x291   :  { %1262 = shalt.err (!%p1259_p4)
}
 0x292   :  { %s1263_s27 = scalar_lea.hbm %s1554_s4, 128 }
 0x293   :  { %p1264_p5 = scmp.ne.s32.totalorder %s1554_s4, %s1263_s27  ;;  %p1267_p6 = scmp.lt.u32.totalorder %s1263_s27, %s1554_s4 }
 0x295   :  { %p1269_p7 = pnand %p1267_p6, %p1264_p5 }
 0x297   :  { %1272 = shalt.err (!%p1269_p7)
}
 0x298   :  { %1059 = dma.vmem_to_hbm [thread:$0]  %s1057_s24, 128, %s1554_s4, [#allocation3]  }
 0x299   :  { %1273 = dma.done.wait [#allocation3], 128  }
 0x29a   :  { %1274 = vsyncadd [#allocation3], 4294967168 }
 0x29b   :  { %1063 = vsyncpa [#allocation3], 1 }

</bundles_post_ra>
